<compile_context>
chip_gen: v6e
topology: v6e:2x2x1
jax: 0.10.0
libtpu: 0.0.40
codegen_flags: <defaults>
</compile_context>

<pallas_src>
import math

import jax
import jax.numpy as jnp
from jax.experimental import pallas as pl
from jax.experimental.pallas import tpu as pltpu


def _round_up(x, m):
    return ((x + m - 1) // m) * m


# ----------------------------------------------------------------------------
# Block-occupancy metadata of the (densely stored) normalized adjacency.
# ----------------------------------------------------------------------------
def build_block_structure(a, tm, tk):
    """Front-packed lists of nonzero (tm, tk) column blocks per row block.

    Returns (col_flat [nbi*max_nnz] int32, counts [nbi] int32, max_nnz int).
    Padded tail entries repeat the last valid column id so the Pallas
    pipeline issues no fresh DMA for skipped steps.

    NOTE: uses concrete values (int(counts.max())) -> call outside jit.
    """
    n = a.shape[0]
    nbi, nbk = n // tm, n // tk
    occ = jnp.abs(a).reshape(nbi, tm, nbk, tk).sum(axis=(1, 3)) > 0.0    # [nbi, nbk]
    counts = occ.sum(axis=1).astype(jnp.int32)                           # [nbi]

    # Stable front-packing of nonzero block-column ids (ascending order).
    key = jnp.where(occ, 0, nbk).astype(jnp.int32) + \
        jnp.arange(nbk, dtype=jnp.int32)[None, :]
    col_ids = jnp.argsort(key, axis=1).astype(jnp.int32)                 # [nbi, nbk]

    # Replace padded entries with the last valid id (dedup -> DMA skipped).
    pos = jnp.arange(nbk, dtype=jnp.int32)[None, :]
    last_valid = jnp.maximum(counts - 1, 0)[:, None]
    last_ids = jnp.take_along_axis(col_ids, last_valid, axis=1)
    col_ids = jnp.where(pos < counts[:, None], col_ids, last_ids)

    max_nnz = max(int(counts.max()), 1)
    col_flat = col_ids[:, :max_nnz].reshape(-1)
    return col_flat, counts, max_nnz


# ----------------------------------------------------------------------------
# Kernel: block-sparse O = A @ E  (A: bf16 [N, N], E: bf16 [N, D], O: f32)
# ----------------------------------------------------------------------------
def _propagate_kernel(col_ref, cnt_ref, a_ref, e_ref, o_ref):
    i = pl.program_id(0)
    j = pl.program_id(1)

    @pl.when(j == 0)
    def _():
        o_ref[...] = jnp.zeros_like(o_ref)

    # Skip padded steps (j beyond this row block's nonzero-block count).
    @pl.when(j < cnt_ref[i])
    def _():
        o_ref[...] += jnp.dot(a_ref[...], e_ref[...],
                              preferred_element_type=jnp.float32)


def block_sparse_propagate(a_bf16, e_bf16, col_flat, counts, max_nnz, *, tm, tk):
    """Replacement for torch.sparse.mm(A, E): walks only nonzero A tiles."""
    n = a_bf16.shape[0]
    d = e_bf16.shape[1]
    nbi = n // tm

    def a_map(i, j, col, cnt):
        return (i, col[i * max_nnz + j])

    def e_map(i, j, col, cnt):
        return (col[i * max_nnz + j], 0)

    def o_map(i, j, col, cnt):
        return (i, 0)

    return pl.pallas_call(
        _propagate_kernel,
        out_shape=jax.ShapeDtypeStruct((n, d), jnp.float32),
        grid_spec=pltpu.PrefetchScalarGridSpec(
            num_scalar_prefetch=2,
            grid=(nbi, max_nnz),
            in_specs=[
                pl.BlockSpec((tm, tk), a_map),
                pl.BlockSpec((tk, d), e_map),
            ],
            out_specs=pl.BlockSpec((tm, d), o_map),
        ),
        compiler_params=pltpu.CompilerParams(
            dimension_semantics=("parallel", "arbitrary"),
            vmem_limit_bytes=32 * 1024 * 1024,
        ),
    )(col_flat, counts, a_bf16, e_bf16)


# ----------------------------------------------------------------------------
# LightGCN forward (matches torch LightGCN.forward semantics)
# ----------------------------------------------------------------------------
def lightgcn_forward(norm_adj, user_embed, item_embed, user, pos_item, neg_item,
                     layer_num, *, tm=128, tk=128):
    n_user = user_embed.shape[0]
    e0 = jnp.concatenate([user_embed, item_embed], axis=0)   # [N, D] f32
    n, d = e0.shape

    # Pad N to the tile and D to a lane-dense multiple of 128.
    if n <= max(tm, tk):
        tm = tk = n                     # tiny graphs: single-block matmul
        n_pad = n
    else:
        n_pad = _round_up(n, math.lcm(tm, tk))
    d_pad = _round_up(d, 128)

    a = norm_adj.astype(jnp.float32)
    if n_pad != n:
        a = jnp.pad(a, ((0, n_pad - n), (0, n_pad - n)))
    e = jnp.pad(e0.astype(jnp.float32), ((0, n_pad - n), (0, d_pad - d)))

    # Block occupancy depends only on A -> build once, reuse for every layer.
    col_flat, counts, max_nnz = build_block_structure(a, tm, tk)
    a_bf16 = a.astype(jnp.bfloat16)

    acc = e                              # running f32 sum (layer-0 included)
    cur = e.astype(jnp.bfloat16)
    for _ in range(layer_num):
        nxt = block_sparse_propagate(a_bf16, cur, col_flat, counts, max_nnz,
                                     tm=tm, tk=tk)           # f32 [n_pad, d_pad]
        acc = acc + nxt
        cur = nxt.astype(jnp.bfloat16)

    mean_e = (acc / jnp.float32(layer_num + 1))[:n, :d]       # == stack(...).mean(1)

    user_table = mean_e[:n_user, :]
    item_table = mean_e[n_user:, :]
    return user_table[user, :], item_table[pos_item, :], item_table[neg_item, :]


# ----------------------------------------------------------------------------
# Deterministic parameter / adjacency construction
# ----------------------------------------------------------------------------
def xavier_uniform(key, shape):
    fan_out, fan_in = shape
    bound = jnp.sqrt(6.0 / (fan_in + fan_out))
    return jax.random.uniform(key, shape, jnp.float32, -bound, bound)


def build_norm_adj(key, n_user, n_item):
    """Symmetric-normalized bipartite adjacency, materialized densely."""
    r = (jax.random.uniform(key, (n_user, n_item)) < 0.1).astype(jnp.float32)
    n = n_user + n_item
    a = jnp.zeros((n, n), jnp.float32)
    a = a.at[:n_user, n_user:].set(r)
    a = a.at[n_user:, :n_user].set(r.T)
    deg = a.sum(axis=1)
    d_inv_sqrt = jnp.where(deg > 0.0, 1.0 / jnp.sqrt(deg), 0.0)
    return a * d_inv_sqrt[:, None] * d_inv_sqrt[None, :]


if __name__ == "__main__":
    # Tile-aligned shapes; bipartite zero blocks exercise the skip path.
    n_user, n_item = 128, 256          # N = 384 -> 3x3 blocks of 128x128
    embed_size = 64                    # padded internally to 128 lanes
    layer_num = 3
    batch_size = 8

    key = jax.random.PRNGKey(0)
    k_u, k_i, k_adj, k_usr, k_pos, k_neg = jax.random.split(key, 6)

    user_embed = xavier_uniform(k_u, (n_user, embed_size))
    item_embed = xavier_uniform(k_i, (n_item, embed_size))
    norm_adj = build_norm_adj(k_adj, n_user, n_item)

    user = jax.random.randint(k_usr, (batch_size,), 0, n_user)
    pos_item = jax.random.randint(k_pos, (batch_size,), 0, n_item)
    neg_item = jax.random.randint(k_neg, (batch_size,), 0, n_item)

    u_e, p_e, n_e = lightgcn_forward(
        norm_adj, user_embed, item_embed, user, pos_item, neg_item, layer_num
    )
    jax.block_until_ready((u_e, p_e, n_e))

    # Reference 1: same mixed precision (bf16 operands, f32 accumulation).
    a_bf = norm_adj.astype(jnp.bfloat16)
    cur = jnp.concatenate([user_embed, item_embed], axis=0).astype(jnp.float32)
    acc = cur
    for _ in range(layer_num):
        cur = jnp.dot(a_bf, cur.astype(jnp.bfloat16),
                      preferred_element_type=jnp.float32)
        acc = acc + cur
    mean_mixed = acc / (layer_num + 1)

    # Reference 2: pure f32 (exact torch semantics), loose tolerance for bf16.
    cur = jnp.concatenate([user_embed, item_embed], axis=0)
    acc = cur
    for _ in range(layer_num):
        cur = norm_adj @ cur
        acc = acc + cur
    mean_f32 = acc / (layer_num + 1)

    def gather(tab):
        return tab[:n_user][user], tab[n_user:][pos_item], tab[n_user:][neg_item]

    u_m, p_m, n_m = gather(mean_mixed)
    u_f, p_f, n_f = gather(mean_f32)

    assert u_e.shape == (batch_size, embed_size)
    assert p_e.shape == (batch_size, embed_size)
    assert n_e.shape == (batch_size, embed_size)

    assert jnp.allclose(u_e, u_m, atol=1e-3, rtol=1e-2)
    assert jnp.allclose(p_e, p_m, atol=1e-3, rtol=1e-2)
    assert jnp.allclose(n_e, n_m, atol=1e-3, rtol=1e-2)

    assert jnp.allclose(u_e, u_f, atol=5e-3, rtol=5e-2)
    assert jnp.allclose(p_e, p_f, atol=5e-3, rtol=5e-2)
    assert jnp.allclose(n_e, n_f, atol=5e-3, rtol=5e-2)

    print("KERNEL_OK")
</pallas_src>

<mosaic_0001>
module attributes {stable_mosaic.version = 11 : i64} {
  func.func @_propagate_kernel(%arg0: i32, %arg1: i32, %arg2: memref<6xi32, #tpu.memory_space<smem>>, %arg3: memref<3xi32, #tpu.memory_space<smem>>, %arg4: memref<128x128xbf16, #tpu.memory_space<vmem>>, %arg5: memref<128x128xbf16, #tpu.memory_space<vmem>>, %arg6: memref<128x128xf32, #tpu.memory_space<vmem>>) attributes {dimension_semantics = [#tpu.dimension_semantics<parallel>, #tpu.dimension_semantics<arbitrary>], iteration_bounds = array<i64: 3, 2>, scalar_prefetch = 2 : i64, scratch_operands = 0 : i64, tpu.core_type = #tpu.core_type<tc>, window_params = [{transform_indices = @transform_0, window_bounds = array<i64: 128, 128>}, {transform_indices = @transform_1, window_bounds = array<i64: 128, 128>}, {transform_indices = @transform_2, window_bounds = array<i64: 128, 128>}]} {
    %c0_i32 = arith.constant 0 : i32
    %0 = arith.cmpi eq, %arg1, %c0_i32 : i32
    %1 = arith.extui %0 : i1 to i32
    %c0_i32_0 = arith.constant 0 : i32
    %2 = arith.cmpi ne, %1, %c0_i32_0 : i32
    scf.if %2 {
      %cst = arith.constant 0.000000e+00 : f32
      %8 = vector.broadcast %cst : f32 to vector<128x128xf32>
      %c0 = arith.constant 0 : index
      %c0_2 = arith.constant 0 : index
      %9 = vector.load %arg6[%c0, %c0_2] : memref<128x128xf32, #tpu.memory_space<vmem>>, vector<128x128xf32>
      tpu.vector_store %arg6[%c0, %c0_2], %8 {strides = array<i32>} : memref<128x128xf32, #tpu.memory_space<vmem>>, vector<128x128xf32>,
    } else {
    }
    %3 = arith.index_cast %arg0 : i32 to index
    %4 = memref.load %arg3[%3] : memref<3xi32, #tpu.memory_space<smem>>
    %5 = arith.cmpi slt, %arg1, %4 : i32
    %6 = arith.extui %5 : i1 to i32
    %c0_i32_1 = arith.constant 0 : i32
    %7 = arith.cmpi ne, %6, %c0_i32_1 : i32
    scf.if %7 {
      %c0 = arith.constant 0 : index
      %c0_2 = arith.constant 0 : index
      %8 = vector.load %arg6[%c0, %c0_2] : memref<128x128xf32, #tpu.memory_space<vmem>>, vector<128x128xf32>
      %c0_3 = arith.constant 0 : index
      %c0_4 = arith.constant 0 : index
      %9 = vector.load %arg4[%c0_3, %c0_4] : memref<128x128xbf16, #tpu.memory_space<vmem>>, vector<128x128xbf16>
      %c0_5 = arith.constant 0 : index
      %c0_6 = arith.constant 0 : index
      %10 = vector.load %arg5[%c0_5, %c0_6] : memref<128x128xbf16, #tpu.memory_space<vmem>>, vector<128x128xbf16>
      %cst = arith.constant dense<0.000000e+00> : vector<128x128xf32>
      %11 = tpu.matmul %9, %10, %cst {dimension_numbers = #tpu.dot_dimension_numbers<[1], [0], [0], [1], [0, 0, 1, 1], [], []>} : vector<128x128xbf16>, vector<128x128xbf16>, vector<128x128xf32> -> vector<128x128xf32>
      %12 = arith.addf %8, %11 : vector<128x128xf32>
      %c0_7 = arith.constant 0 : index
      %c0_8 = arith.constant 0 : index
      %13 = vector.load %arg6[%c0_7, %c0_8] : memref<128x128xf32, #tpu.memory_space<vmem>>, vector<128x128xf32>
      tpu.vector_store %arg6[%c0_7, %c0_8], %12 {strides = array<i32>} : memref<128x128xf32, #tpu.memory_space<vmem>>, vector<128x128xf32>,
    } else {
    }
    return
  }
  func.func @transform_0(%arg0: i32, %arg1: i32, %arg2: memref<6xi32, #tpu.memory_space<smem>>, %arg3: memref<3xi32, #tpu.memory_space<smem>>) -> (i32, i32) {
    %c2_i32 = arith.constant 2 : i32
    %0 = arith.muli %arg0, %c2_i32 : i32
    %1 = arith.addi %0, %arg1 : i32
    %2 = arith.index_cast %1 : i32 to index
    %3 = memref.load %arg2[%2] : memref<6xi32, #tpu.memory_space<smem>>
    %c0_i32 = arith.constant 0 : i32
    return %arg0, %3 : i32, i32
  }
  func.func @transform_1(%arg0: i32, %arg1: i32, %arg2: memref<6xi32, #tpu.memory_space<smem>>, %arg3: memref<3xi32, #tpu.memory_space<smem>>) -> (i32, i32) {
    %c2_i32 = arith.constant 2 : i32
    %0 = arith.muli %arg0, %c2_i32 : i32
    %1 = arith.addi %0, %arg1 : i32
    %2 = arith.index_cast %1 : i32 to index
    %3 = memref.load %arg2[%2] : memref<6xi32, #tpu.memory_space<smem>>
    %c0_i32 = arith.constant 0 : i32
    %c0_i32_0 = arith.constant 0 : i32
    return %3, %c0_i32 : i32, i32
  }
  func.func @transform_2(%arg0: i32, %arg1: i32, %arg2: memref<6xi32, #tpu.memory_space<smem>>, %arg3: memref<3xi32, #tpu.memory_space<smem>>) -> (i32, i32) {
    %c0_i32 = arith.constant 0 : i32
    %c0_i32_0 = arith.constant 0 : i32
    return %arg0, %c0_i32 : i32, i32
  }
}

</mosaic_0001>

<bundles_post_ra>
// kernel: tpu_custom_call.1
= control target key start
LH: loop header
LB: loop body
LE: loop exit
PB: predicated region body
PF: predicated region fallthrough
CT: control target
= control target key end

     0   :  { %s1179_s15 = smov [#allocation3]   ;;  %s1657_s0 = inlined_call_operand.hbm [shape: s32[6], index: 0, kind: input, shape index: {}]   ;;  %s1658_s2 = inlined_call_operand.hbm [shape: bf16[384,384], index: 2, kind: input, shape index: {}]   ;;  %s1659_s3 = inlined_call_operand.hbm [shape: bf16[384,128], index: 3, kind: input, shape index: {}]   ;;  %s1660_s4 = inlined_call_operand.hbm [shape: f32[384,128], index: 4, kind: output, shape index: {}]   ;;  %s1661_s1 = inlined_call_operand.vmem [shape: s32[3], index: 1, kind: input, shape index: {}]  }
   0x1   :  { %1674 = sst [smem:[#allocation25_spill]] %s1658_s2  ;;  %s11_s20 = sshll.u32 %s1661_s1, 4  ;;  %s12_s20 = int_to_ptr.vmem [resolvable:$true] %s11_s20 }
   0x2   :  { %1675 = sst [smem:[#allocation26_spill]] %s1660_s4  ;;  %s959_s21 = scalar_lea.vmem %s12_s20, 16 }
   0x3   :  { %10 = dma.hbm_to_smem %s1657_s0, 16, %s1179_s15, [#allocation2] }
   0x4   :  { %p960_p0 = scmp.ne.s32.totalorder %s12_s20, %s959_s21  ;;  %p964_p1 = scmp.lt.s32.totalorder %s12_s20, %s12_s20 }
   0x5   :  { %p965_p2 = scmp.lt.s32.totalorder %s959_s21, %s959_s21 }
   0x7   :  { %p966_p3 = por %p965_p2, %p964_p1 }
   0x9   :  { %p967_p4 = pnand %p966_p3, %p960_p0 }
   0xb   :  { %970 = shalt.err (!%p967_p4)  }
   0xc   :  { %s1180_s22 = smov [#allocation4]  }
   0xd   :  { %14 = dma.vmem_to_smem %s12_s20, 16, %s1180_s22, [#allocation2] }
   0xe   :  { %1109 = dma.done.wait [#allocation2], 32 }
   0xf   :  { %1110 = vsyncadd [#allocation2], 4294967264 }
  0x10   :  { %16 = sfence }
  0x11   :  { %17 = vsyncpa [#allocation6], 0 }
  0x12   :  { %19 = vsyncpa [#allocation6 + $0x1], 0 }
  0x13   :  { %20 = vsyncpa [#allocation9], 0 }
  0x14   :  { %22 = vsyncpa [#allocation9 + $0x1], 0 }
  0x15   :  { %23 = vsyncpa [#allocation7], 0 }
  0x16   :  { %25 = vsyncpa [#allocation7 + $0x1], 0  ;;  %s1221_s0 = smov 0   ;;  %s1223_s1 = smov 0  }
  0x17   :  { %s1225_s23 = smov 0   ;;  %s1227_s24 = smov 0  }
  0x18   :  { %s1229_s25 = smov 0   ;;  %s1231_s26 = smov 0  }
  0x19   :  { %s1233_s27 = smov 0   ;;  %s1235_s28 = smov 0  }
  0x1a   :  { %s1237_s29 = smov 0   ;;  %s1239_s30 = smov 0  }
  0x1b   :  { %s1241_s5 = smov 0   ;;  %s1243_s6 = smov 0  }
  0x1c   :  { %s1245_s7 = smov 0   ;;  %s1247_s8 = smov 0  }
  0x1d LB: > { %1676 = sst [smem:[#allocation19_spill]] %s1161_s30  ;;  %s40_s9 = sadd.s32 1, %s1169_s6  ;;  %s1177_s8 = sphi %s1247_s8, %s31_s8   ;;  %s1173_s7 = sphi %s1245_s7, %s1727_s7   ;;  %s1169_s6 = sphi %s1243_s6, %s1715_s6   ;;  %s1165_s5 = sphi %s1241_s5, %s1726_s5   ;;  %s1161_s30 = sphi %s1239_s30, %s1713_s30   ;;  %s1157_s29 = sphi %s1237_s29, %s1725_s29   ;;  %s1153_s28 = sphi %s1235_s28, %s1724_s28   ;;  %s1149_s27 = sphi %s1233_s27, %s1723_s27   ;;  %s1145_s26 = sphi %s1231_s26, %s1722_s26   ;;  %s1141_s25 = sphi %s1229_s25, %s1721_s25   ;;  %s1137_s24 = sphi %s1227_s24, %s1720_s24   ;;  %s1133_s23 = sphi %s1225_s23, %s1719_s23   ;;  %s1129_s1 = sphi %s1223_s1, %s1718_s1   ;;  %s1125_s0 = sphi %s1221_s0, %s1717_s0  }
  0x1e   : > { %1677 = sst [smem:[#allocation20_spill]] %s1165_s5  ;;  %s43_s10 = sadd.s32 1, %s1173_s7 }
  0x1f   : > { %1678 = sst [smem:[#allocation21_spill]] %s1169_s6  ;;  %p41_p5 = scmp.ge.s32.totalorder %s40_s9, 2 }
  0x20   : > { %1679 = sst [smem:[#allocation22_spill]] %s1173_s7  ;;  %s679_s11 = sshll.u32 %s1173_s7, 1 }
  0x21   : > { %s1295_s12 = sadd.s32 %s1169_s6, %s679_s11  ;;  %s1729_s9 = smov (%p41_p5, %s40_s9), 0 }
  0x22   : > { %1680 = sst [smem:[#allocation23_spill]] %s1729_s9  ;;  %s1731_s10 = smov (!%p41_p5, %s43_s10), %s1173_s7 }
  0x23   : > { %s49_s14 = sld [smem:[#allocation3 + %s1295_s12]]  ;;  %p65_p6 = scmp.ne.s32.totalorder %s1157_s29, %s1153_s28 }
  0x24   : > { %p45_p7 = scmp.ge.s32.totalorder %s1731_s10, 3  ;;  %p1668_p8 = scmp.eq.s32.totalorder %s1177_s8, 0 }
  0x25   : > { %p1667_p11 = scmp.lt.s32.totalorder %s1177_s8, 6  ;;  %s153_s20 = sand.u32 1, %s1157_s29  }
  0x26   : > { %s1733_s10 = smov (%p45_p7, %s1731_s10), 0  ;;  %p1311_p10 = por %p1668_p8, %p65_p6 }
  0x27   : > { %1681 = sst [smem:[#allocation24_spill]] %s1733_s10  ;;  %s680_s16 = sshll.u32 %s1733_s10, 1 }
  0x28   : > { %s1319_s17 = ssub.s32 %s1173_s7, %s1733_s10  ;;  %s1322_s18 = sadd.s32 %s680_s16, %s1729_s9 }
  0x29   : > { %s52_s19 = sld [smem:[#allocation3 + %s1322_s18]]  ;;  %s685_s21 = sshll.u32 %s153_s20, 6 }
  0x2a   : > { %s787_s22 = smul.u32 48, %s1173_s7  ;;  %s157_s16 = scalar_lea.vmem [#allocation5], %s685_s21 }
  0x2b   : > { %s788_s11 = scalar_select %p1311_p10, [#allocation3], [#allocation11] }
  0x2c   : > { %s789_s13 = scalar_select %p1311_p10, %s1295_s12, 0 }
  0x2d   : > { %s1735_s11 = smov (!%p1667_p11, %s788_s11), [#allocation13]  ;;  %s169_s9 = sshll.u32 %s157_s16, 4  ;;  %s1336_s9 = int_to_ptr.vmem [resolvable:$true] %s169_s9 }
  0x2e   : > { %p1342_p0 = pnand %p1667_p11, %p1311_p10  ;;  %s1737_s13 = smov (!%p1667_p11, %s789_s13), 0 }
  0x2f   : > { %s54_s10 = ssub.s32 %s49_s14, %s52_s19  ;;  %s1684_s7 = sadd.s32 1, %s1157_s29 }
  0x30   : > { %s55_s6 = sor.u32 %s54_s10, %s1319_s17  ;;  %s160_s30 = sld [smem:[%s1735_s11 + %s1737_s13]] }
  0x31   : > { %p56_p13 = scmp.eq.s32.totalorder %s55_s6, 0  ;;  %p694_p1 = scmp.ge.s32.totalorder %s1177_s8, 1 }
  0x32   : > { %p201_p2 = scmp.lt.s32.totalorder %s1177_s8, 7  ;;  %s1686_s2 = sld [smem:[#allocation25_spill]] }
  0x33   : > { %s1351_s5 = scalar_select %p56_p13, %s1157_s29, %s1684_s7  }
  0x34   : > { %p1355_p3 = pnand %p694_p1, %p201_p2  ;;  %s1364_s16 = scalar_lea.sflag [#allocation6], %s153_s20 }
  0x35   : > { %p973_p5 = pneg %p1342_p0 }
  0x36   : > { %s1685_s10 = scalar_select %p1355_p3, 1, 0 }
  0x37   : > { %s166_s6 = sadd.s32 %s787_s22, %s160_s30 }
  0x38   : > { %s689_s14 = sshll.u32 %s166_s6, 6  ;;  %s976_s30 = scalar_lea.hbm %s1686_s2, 9216 }
  0x39   : > { %s1362_s21 = scalar_lea.hbm %s1686_s2, %s689_s14 }
  0x3a   : > { %s971_s7 = scalar_lea.hbm %s1362_s21, 1024  ;;  %p977_p10 = scmp.lt.s32.totalorder %s1362_s21, %s1686_s2 }
  0x3b   : > { %p972_p4 = scmp.ne.s32.totalorder %s1362_s21, %s971_s7  ;;  %p978_p13 = scmp.lt.s32.totalorder %s976_s30, %s971_s7 }
  0x3d   : > { %p974_p6 = pnand %p973_p5, %p972_p4  ;;  %p979_p1 = por %p978_p13, %p977_p10 }
  0x3f   : > { %p975_p7 = pneg %p974_p6 }
  0x41   : > { %p980_p2 = pnand %p979_p1, %p975_p7 }
  0x43   : > { %983 = shalt.err (!%p980_p2)
}
  0x44   : > { %s984_s20 = scalar_lea.vmem %s1336_s9, 1024  ;;  %s1181_s14 = smov [#allocation5]  }
  0x45   : > { %p985_p11 = scmp.ne.s32.totalorder %s1336_s9, %s984_s20  ;;  %s989_s15 = sshll.u32 %s1181_s14, 4  ;;  %s990_s15 = int_to_ptr.vmem [resolvable:$false] %s989_s15 }
  0x46   : > { %s991_s19 = scalar_lea.vmem %s990_s15, 2048  ;;  %p992_p6 = scmp.lt.s32.totalorder %s1336_s9, %s990_s15 }
  0x47   : > { %p987_p12 = pnand %p985_p11, %p973_p5  ;;  %p993_p8 = scmp.lt.s32.totalorder %s991_s19, %s984_s20 }
  0x49   : > { %p988_p4 = pneg %p987_p12  ;;  %p994_p9 = por %p993_p8, %p992_p6 }
  0x4b   : > { %p995_p3 = pnand %p994_p9, %p988_p4 }
  0x4d   : > { %998 = shalt.err (!%p995_p3)
}
  0x4e   : > { %s1182_s7 = smov 192   ;;  %s1669_s13 = smov 64  }
  0x4f   : > { %s1670_s11 = smov 4   ;;  %s677_s30 = sadd.s32 4294967295, %s1177_s8  }
  0x50   : > { %803 = dma.hbm_to_vmem [thread:$0]  (!%p1342_p0), %s1362_s21, 1024, %s1336_s9, %s1364_s16, %s1182_s7, %s1669_s13, %s1670_s11  }
  0x51   : > { %s678_s22 = sadd.s32 4294967294, %s1177_s8   ;;  %p72_p8 = scmp.eq.s32.totalorder %s677_s30, 0 }
  0x52   : > { %s83_s6 = sld [smem:[#allocation3 + %s1295_s12]]  ;;  %s90_s20 = sadd.s32 1, %s1145_s26 }
  0x53   : > { %p1687_p9 = scmp.ne.s32.totalorder %s1153_s28, %s1149_s27  ;;  %s86_s15 = sld [smem:[#allocation3 + %s1322_s18]] }
  0x54   : > { %p97_p12 = scmp.ne.s32.totalorder %s1145_s26, %s1141_s25  ;;  %p103_p3 = scmp.ne.s32.totalorder %s1141_s25, %s1137_s24 }
  0x55   : > { %p1394_p11 = por %p72_p8, %p1687_p9  ;;  %s116_s4 = sadd.s32 1, %s1133_s23 }
  0x56   : > { %p126_p0 = scmp.ne.s32.totalorder %s1133_s23, %s1129_s1  ;;  %p1689_p5 = scmp.eq.s32.totalorder %s1177_s8, 0 }
  0x57   : > { %s1688_s14 = scalar_select %p1394_p11, 1, 0 }
  0x58   : > { %p1408_p7 = por %p97_p12, %p1689_p5  ;;  %p1412_p10 = por %p103_p3, %p72_p8 }
  0x59   : > { %p1692_p13 = scmp.eq.s32.totalorder %s1319_s17, 0  ;;  %p127_p1 = scmp.eq.s32.totalorder %s677_s30, 5 }
  0x5a   : > { %s1691_s27 = scalar_select %p1412_p10, 1, 0 }
  0x5b   : > { %s1419_s24 = scalar_select %p1692_p13, %s1133_s23, %s116_s4  }
  0x5c   : > { %p132_p2 = scmp.ne.s32.totalorder %s1129_s1, %s1125_s0  ;;  %s87_s18 = ssub.s32 %s83_s6, %s86_s15 }
  0x5d   : > { %p133_p4 = scmp.eq.s32.totalorder %s678_s22, 5  ;;  %p88_p6 = scmp.eq.s32.totalorder %s87_s18, 0 }
  0x5e   : > { %p1423_p9 = por %p127_p1, %p126_p0  ;;  %s179_s19 = sand.u32 1, %s1145_s26  }
  0x5f   : > { %p1427_p12 = por %p133_p4, %p132_p2  ;;  %s690_s17 = sshll.u32 %s179_s19, 6 }
  0x60   : > { %s1693_s21 = scalar_select %p1423_p9, 1, 0 }
  0x61   : > { %s1694_s16 = scalar_select %p1427_p12, 1, 0 }
  0x62   : > { %s1433_s7 = scalar_select %p88_p6, %s1145_s26, %s90_s20  }
  0x63   : > { %p1695_p8 = scmp.lt.s32.totalorder %s1177_s8, 6  ;;  %s1739_s12 = smov (!%p1408_p7, %s1295_s12), 0 }
  0x64   : > { %s791_s22 = scalar_select %p1408_p7, [#allocation3], [#allocation12] }
  0x65   : > { %p1439_p3 = pnand %p1695_p8, %p1408_p7  ;;  %p1697_p0 = pmov %p1695_p8 }
  0x66   : > { %s183_s15 = scalar_lea.vmem [#allocation8], %s690_s17  ;;  %s1459_s9 = scalar_lea.sflag [#allocation9], %s179_s19 }
  0x67   : > { %s1741_s22 = smov (!%p1697_p0, %s791_s22), [#allocation14]  ;;  %p1698_p5 = pmov %p1697_p0 }
  0x68   : > { %s193_s20 = sshll.u32 %s183_s15, 4  ;;  %p1001_p13 = pneg %p1439_p3  ;;  %s1452_s20 = int_to_ptr.vmem [resolvable:$true] %s193_s20 }
  0x69   : > { %s1743_s12 = smov (!%p1698_p5, %s1739_s12), 0 }
  0x6a   : > { %s186_s6 = sld [smem:[%s1741_s22 + %s1743_s12]]  ;;  %s1004_s22 = scalar_lea.hbm %s1659_s3, 3072 }
  0x70   : > { %s721_s4 = sshll.u32 %s186_s6, 10 }
  0x71   : > { %s1457_s11 = scalar_lea.hbm %s1659_s3, %s721_s4 }
  0x72   : > { %s999_s2 = scalar_lea.hbm %s1457_s11, 1024  ;;  %p1005_p4 = scmp.lt.s32.totalorder %s1457_s11, %s1659_s3 }
  0x73   : > { %p1000_p7 = scmp.ne.s32.totalorder %s1457_s11, %s999_s2  ;;  %p1006_p6 = scmp.lt.s32.totalorder %s1004_s22, %s999_s2 }
  0x75   : > { %p1002_p1 = pnand %p1001_p13, %p1000_p7  ;;  %p1007_p8 = por %p1006_p6, %p1005_p4 }
  0x77   : > { %p1003_p2 = pneg %p1002_p1 }
  0x79   : > { %p1008_p0 = pnand %p1007_p8, %p1003_p2 }
  0x7b   : > { %1011 = shalt.err (!%p1008_p0)
}
  0x7c   : > { %s1012_s13 = scalar_lea.vmem %s1452_s20, 1024  ;;  %s1185_s19 = smov [#allocation8]  }
  0x7d   : > { %p1013_p5 = scmp.ne.s32.totalorder %s1452_s20, %s1012_s13  ;;  %s1017_s4 = sshll.u32 %s1185_s19, 4  ;;  %s1018_s4 = int_to_ptr.vmem [resolvable:$false] %s1017_s4 }
  0x7e   : > { %s1019_s18 = scalar_lea.vmem %s1018_s4, 2048  ;;  %p1020_p1 = scmp.lt.s32.totalorder %s1452_s20, %s1018_s4 }
  0x7f   : > { %p1015_p12 = pnand %p1013_p5, %p1001_p13  ;;  %p1021_p9 = scmp.lt.s32.totalorder %s1019_s18, %s1012_s13 }
  0x81   : > { %p1016_p7 = pneg %p1015_p12  ;;  %p1022_p10 = por %p1021_p9, %p1020_p1 }
  0x83   : > { %p1023_p11 = pnand %p1022_p10, %p1016_p7 }
  0x85   : > { %1026 = shalt.err (!%p1023_p11)
}
  0x86   : > { %s1699_s2 = smov 4   ;;  %s1700_s12 = smov 64  }
  0x87   : > { %808 = dma.hbm_to_vmem [thread:$0]  (!%p1439_p3), %s1457_s11, 1024, %s1452_s20, %s1459_s9, %s1700_s12, %s1700_s12, %s1699_s2  }
  0x88   : > { %p1701_p12 = scmp.ne.s32.totalorder %s1685_s10, 0 }
  0x89   : > { %s207_s17 = sand.u32 (!%p1701_p12), 1, %s1153_s28   ;;  %p1702_p11 = scmp.ne.s32.totalorder (!%p1701_p12), %s1688_s14, 0 }
  0x8a   : > { %205 = sbr.rel (%p1701_p12) target bundleno = 459 (0x1cb), region = 28  ;;  %s695_s22 = sshll.u32 (!%p1701_p12), %s207_s17, 6 }
  0x8b   : > { %s208_s6 = scalar_lea.sflag (!%p1701_p12), [#allocation6], %s207_s17  ;;  %s1486_s15 = scalar_lea.vmem (!%p1701_p12), [#allocation5], %s695_s22 }
  0x8f   : > { %1112 = dma.done.wait (%p1702_p11), %s208_s6, 1024  }
  0x90   : > { %1114 = vsyncadd (%p1702_p11), %s208_s6, 4294966272  ;;  %s216_s30 = sand.u32 1, %s1141_s25   ;;  %p1703_p10 = scmp.ne.s32.totalorder %s1691_s27, 0 }
  0x91   : > { %s696_s13 = sshll.u32 %s216_s30, 6  ;;  %s217_s11 = scalar_lea.sflag [#allocation9], %s216_s30 }
  0x92   : > { %s1493_s20 = scalar_lea.vmem [#allocation8], %s696_s13 }
  0x93   : > { %1116 = dma.done.wait (%p1703_p10), %s217_s11, 1024  }
  0x94   : > { %1118 = vsyncadd (%p1703_p10), %s217_s11, 4294966272  ;;  %s243_s10 = sand.u32 1, %s1129_s1   ;;  %s1704_s14 = sld [smem:[#allocation19_spill]] }
  0x95   : > { %s697_s9 = sshll.u32 %s243_s10, 7 }
  0x96   : > { %s1502_s19 = scalar_lea.vmem [#allocation10], %s697_s9 }
  0x9a   : > { %p698_p9 = scmp.ne.s32.totalorder %s1704_s14, 0 }
  0x9c   : > { %259 = sbr.rel (%p698_p9) target bundleno = 170 (0xaa), region = 40 }
  0xa1   : > { %v1186_v0 = vmov 0.0  }
  0xa2   : > { %260 = vst [vmem:[%s1502_s19] sm:$0xff] %v1186_v0  ;;  %261 = vst [vmem:[%s1502_s19 + $0x8] sm:$0xff] %v1186_v0 }
  0xa3   : > { %262 = vst [vmem:[%s1502_s19 + $0x10] sm:$0xff] %v1186_v0  ;;  %263 = vst [vmem:[%s1502_s19 + $0x18] sm:$0xff] %v1186_v0 }
  0xa4   : > { %264 = vst [vmem:[%s1502_s19 + $0x20] sm:$0xff] %v1186_v0  ;;  %265 = vst [vmem:[%s1502_s19 + $0x28] sm:$0xff] %v1186_v0 }
  0xa5   : > { %266 = vst [vmem:[%s1502_s19 + $0x30] sm:$0xff] %v1186_v0  ;;  %267 = vst [vmem:[%s1502_s19 + $0x38] sm:$0xff] %v1186_v0 }
  0xa6   : > { %268 = vst [vmem:[%s1502_s19 + $0x40] sm:$0xff] %v1186_v0  ;;  %269 = vst [vmem:[%s1502_s19 + $0x48] sm:$0xff] %v1186_v0 }
  0xa7   : > { %270 = vst [vmem:[%s1502_s19 + $0x50] sm:$0xff] %v1186_v0  ;;  %271 = vst [vmem:[%s1502_s19 + $0x58] sm:$0xff] %v1186_v0 }
  0xa8   : > { %272 = vst [vmem:[%s1502_s19 + $0x60] sm:$0xff] %v1186_v0  ;;  %273 = vst [vmem:[%s1502_s19 + $0x68] sm:$0xff] %v1186_v0 }
  0xa9   : > { %274 = vst [vmem:[%s1502_s19 + $0x70] sm:$0xff] %v1186_v0  ;;  %275 = vst [vmem:[%s1502_s19 + $0x78] sm:$0xff] %v1186_v0 }
  0xaa PF: > { %s1705_s27 = sld [smem:[#allocation20_spill]] }
  0xab   : > { %s1706_s18 = sld [smem:[#allocation19_spill]] }
  0xb0   : > { %s276_s4 = sld [smem:[#allocation4 + %s1705_s27]] }
  0xb6   : > { %p699_p3 = scmp.ge.s32.totalorder %s1706_s18, %s276_s4 }
  0xb8   : > { %280 = sbr.rel (%p699_p3) target bundleno = 432 (0x1b0), region = 44 }
  0xbd   : > { %v935_v1 = vld [vmem:[%s1493_s20 + $0x38] sm:$0xff]   ;;  %v936_v2 = vld [vmem:[%s1493_s20 + $0x30] sm:$0xff]   ;;  %v937_v3 = vld [vmem:[%s1493_s20 + $0x28] sm:$0xff]  }
  0xbe   : > { %739 = vmatprep.subr.bf16.mxu0 %v935_v1  ;;  %771 = vmatprep.subr.bf16.mxu1 %v935_v1  ;;  %v938_v4 = vld [vmem:[%s1493_s20 + $0x20] sm:$0xff]   ;;  %v939_v7 = vld [vmem:[%s1493_s20 + $0x18] sm:$0xff]   ;;  %v940_v8 = vld [vmem:[%s1493_s20 + $0x10] sm:$0xff]  }
  0xbf   : > { %740 = vmatpush3.bf16.msra.mxu0 %v935_v1  ;;  %779 = vmatpush3.bf16.msra.mxu1 %v935_v1  ;;  %v943_v5 = vld [vmem:[%s1486_s15] sm:$0xff]   ;;  %v941_v9 = vld [vmem:[%s1493_s20 + $0x8] sm:$0xff]   ;;  %v947_v13 = vld [vmem:[%s1486_s15 + $0x10] sm:$0xff]  }
  0xc0   : > { %741 = vmatprep.subr.bf16.mxu0 %v936_v2  ;;  %772 = vmatprep.subr.bf16.mxu1 %v936_v2  ;;  %v944_v6 = vld [vmem:[%s1486_s15 + $0x20] sm:$0xff]   ;;  %v945_v11 = vld [vmem:[%s1486_s15 + $0x8] sm:$0xff]   ;;  %v948_v14 = vld [vmem:[%s1486_s15 + $0x30] sm:$0xff]  }
  0xc1   : > { %755 = vmatprep.mubr.bf16.mxu0 %v943_v5  ;;  %763 = vmatprep.mubr.bf16.mxu1 %v944_v6  ;;  %v942_v10 = vld [vmem:[%s1493_s20] sm:$0xff]   ;;  %v946_v12 = vld [vmem:[%s1486_s15 + $0x28] sm:$0xff]   ;;  %v949_v15 = vld [vmem:[%s1486_s15 + $0x18] sm:$0xff]  }
  0xc2   : > { %v950_v16 = vld [vmem:[%s1486_s15 + $0x38] sm:$0xff]   ;;  %v283_v17 = vld [vmem:[%s1502_s19 + $0x10] sm:$0xff]  ;;  %v281_v21 = vld [vmem:[%s1502_s19] sm:$0xff] }
  0xc3   : > { %742 = vmatpush3.bf16.msra.mxu0 %v936_v2  ;;  %780 = vmatpush3.bf16.msra.mxu1 %v936_v2  ;;  %v291_v18 = vld [vmem:[%s1502_s19 + $0x50] sm:$0xff]  ;;  %v289_v22 = vld [vmem:[%s1502_s19 + $0x40] sm:$0xff]  ;;  %v284_v27 = vld [vmem:[%s1502_s19 + $0x18] sm:$0xff] }
  0xc4   : > { %743 = vmatprep.subr.bf16.mxu0 %v937_v3  ;;  %773 = vmatprep.subr.bf16.mxu1 %v937_v3  ;;  %v292_v28 = vld [vmem:[%s1502_s19 + $0x58] sm:$0xff]  ;;  %v282_v33 = vld [vmem:[%s1502_s19 + $0x8] sm:$0xff]  ;;  %v287_v39 = vld [vmem:[%s1502_s19 + $0x30] sm:$0xff] }
  0xc5   : > { %v290_v34 = vld [vmem:[%s1502_s19 + $0x48] sm:$0xff]  ;;  %v295_v40 = vld [vmem:[%s1502_s19 + $0x70] sm:$0xff]  ;;  %v285_v45 = vld [vmem:[%s1502_s19 + $0x20] sm:$0xff] }
  0xc6   : > { %v293_v46 = vld [vmem:[%s1502_s19 + $0x60] sm:$0xff]  ;;  %v288_v51 = vld [vmem:[%s1502_s19 + $0x38] sm:$0xff]  ;;  %v286_v57 = vld [vmem:[%s1502_s19 + $0x28] sm:$0xff] }
  0xc7   : > { %744 = vmatpush3.bf16.msra.mxu0 %v937_v3  ;;  %781 = vmatpush3.bf16.msra.mxu1 %v937_v3  ;;  %v296_v52 = vld [vmem:[%s1502_s19 + $0x78] sm:$0xff]  ;;  %v294_v58 = vld [vmem:[%s1502_s19 + $0x68] sm:$0xff] }
  0xc8   : > { %745 = vmatprep.subr.bf16.mxu0 %v938_v4  ;;  %774 = vmatprep.subr.bf16.mxu1 %v938_v4 }
  0xcb   : > { %746 = vmatpush3.bf16.msra.mxu0 %v938_v4  ;;  %782 = vmatpush3.bf16.msra.mxu1 %v938_v4 }
  0xcc   : > { %747 = vmatprep.subr.bf16.mxu0 %v939_v7  ;;  %775 = vmatprep.subr.bf16.mxu1 %v939_v7 }
  0xcf   : > { %748 = vmatpush3.bf16.msra.mxu0 %v939_v7  ;;  %783 = vmatpush3.bf16.msra.mxu1 %v939_v7 }
  0xd0   : > { %749 = vmatprep.subr.bf16.mxu0 %v940_v8  ;;  %776 = vmatprep.subr.bf16.mxu1 %v940_v8 }
  0xd3   : > { %750 = vmatpush3.bf16.msra.mxu0 %v940_v8  ;;  %784 = vmatpush3.bf16.msra.mxu1 %v940_v8 }
  0xd4   : > { %751 = vmatprep.subr.bf16.mxu0 %v941_v9  ;;  %777 = vmatprep.subr.bf16.mxu1 %v941_v9 }
  0xd7   : > { %752 = vmatpush3.bf16.msra.mxu0 %v941_v9  ;;  %785 = vmatpush3.bf16.msra.mxu1 %v941_v9 }
  0xd8   : > { %753 = vmatprep.subr.bf16.mxu0 %v942_v10  ;;  %778 = vmatprep.subr.bf16.mxu1 %v942_v10 }
  0xdb   : > { %754 = vmatpush3.bf16.msra.mxu0 %v942_v10  ;;  %786 = vmatpush3.bf16.msra.mxu1 %v942_v10 }
  0xde   : > { %756 = vmatmul.mubr.bf16.vlgmr.msra.gmra.mxu0 %v945_v11  ;;  %764 = vmatmul.mubr.bf16.vlgmr.msra.gmra.mxu1 %v946_v12 }
  0xdf   : > { %759 = vmatprep.mubr.bf16.mxu0 %v947_v13  ;;  %767 = vmatprep.mubr.bf16.mxu1 %v948_v14 }
  0xe6   : > { %760 = vmatmul.mubr.bf16.gmra.mxu0 %v949_v15  ;;  %768 = vmatmul.mubr.bf16.gmra.mxu1 %v950_v16 }
 0x19e   : > { %v757_v19 = vpop.f32.mrf.mxu0  ;;  %v765_v20 = vpop.f32.mrf.mxu1 }
 0x19f   : > { %v524_v23 = vadd.f32 %v757_v19, %v283_v17  ;;  %v532_v24 = vadd.f32 %v765_v20, %v291_v18 }
 0x1a0   : > { %v459_v25 = vpop.f32.mrf.mxu0  ;;  %v491_v26 = vpop.f32.mrf.mxu1 }
 0x1a1   : > { %540 = vst [vmem:[%s1502_s19 + $0x10] sm:$0xff] %v524_v23  ;;  %548 = vst [vmem:[%s1502_s19 + $0x50] sm:$0xff] %v532_v24  ;;  %v522_v29 = vadd.f32 %v459_v25, %v281_v21  ;;  %v530_v30 = vadd.f32 %v491_v26, %v289_v22 }
 0x1a2   : > { %v758_v31 = vpop.f32.mrf.mxu0  ;;  %v766_v32 = vpop.f32.mrf.mxu1 }
 0x1a3   : > { %538 = vst [vmem:[%s1502_s19] sm:$0xff] %v522_v29  ;;  %546 = vst [vmem:[%s1502_s19 + $0x40] sm:$0xff] %v530_v30  ;;  %v525_v35 = vadd.f32 %v758_v31, %v284_v27  ;;  %v533_v36 = vadd.f32 %v766_v32, %v292_v28 }
 0x1a4   : > { %v462_v37 = vpop.f32.mrf.mxu0  ;;  %v494_v38 = vpop.f32.mrf.mxu1 }
 0x1a5   : > { %541 = vst [vmem:[%s1502_s19 + $0x18] sm:$0xff] %v525_v35  ;;  %549 = vst [vmem:[%s1502_s19 + $0x58] sm:$0xff] %v533_v36  ;;  %v523_v41 = vadd.f32 %v462_v37, %v282_v33  ;;  %v531_v42 = vadd.f32 %v494_v38, %v290_v34 }
 0x1a6   : > { %v761_v43 = vpop.f32.mrf.mxu0  ;;  %v769_v44 = vpop.f32.mrf.mxu1 }
 0x1a7   : > { %539 = vst [vmem:[%s1502_s19 + $0x8] sm:$0xff] %v523_v41  ;;  %547 = vst [vmem:[%s1502_s19 + $0x48] sm:$0xff] %v531_v42  ;;  %v528_v47 = vadd.f32 %v761_v43, %v287_v39  ;;  %v536_v48 = vadd.f32 %v769_v44, %v295_v40 }
 0x1a8   : > { %v475_v49 = vpop.f32.mrf.mxu0  ;;  %v507_v50 = vpop.f32.mrf.mxu1 }
 0x1a9   : > { %544 = vst [vmem:[%s1502_s19 + $0x30] sm:$0xff] %v528_v47  ;;  %552 = vst [vmem:[%s1502_s19 + $0x70] sm:$0xff] %v536_v48  ;;  %v526_v53 = vadd.f32 %v475_v49, %v285_v45  ;;  %v534_v54 = vadd.f32 %v507_v50, %v293_v46 }
 0x1aa   : > { %v762_v55 = vpop.f32.mrf.mxu0  ;;  %v770_v56 = vpop.f32.mrf.mxu1 }
 0x1ab   : > { %542 = vst [vmem:[%s1502_s19 + $0x20] sm:$0xff] %v526_v53  ;;  %550 = vst [vmem:[%s1502_s19 + $0x60] sm:$0xff] %v534_v54  ;;  %v529_v59 = vadd.f32 %v762_v55, %v288_v51  ;;  %v537_v60 = vadd.f32 %v770_v56, %v296_v52 }
 0x1ac   : > { %v478_v61 = vpop.f32.mrf.mxu0  ;;  %v510_v62 = vpop.f32.mrf.mxu1 }
 0x1ad   : > { %545 = vst [vmem:[%s1502_s19 + $0x38] sm:$0xff] %v529_v59  ;;  %553 = vst [vmem:[%s1502_s19 + $0x78] sm:$0xff] %v537_v60  ;;  %v527_v63 = vadd.f32 %v478_v61, %v286_v57  ;;  %v535_v0 = vadd.f32 %v510_v62, %v294_v58 }
 0x1af   : > { %543 = vst [vmem:[%s1502_s19 + $0x28] sm:$0xff] %v527_v63  ;;  %551 = vst [vmem:[%s1502_s19 + $0x68] sm:$0xff] %v535_v0 }
 0x1b0 PF: > { %s1707_s2 = sld [smem:[#allocation20_spill]]  ;;  %s568_s13 = sshll.u32 %s1502_s19, 4  ;;  %s1578_s13 = int_to_ptr.vmem [resolvable:$true] %s568_s13 }
 0x1b1   : > { %s1708_s6 = sld [smem:[#allocation26_spill]]  ;;  %s1582_s11 = scalar_lea.sflag [#allocation7], %s243_s10 }
 0x1b2   : > { %s1027_s20 = scalar_lea.vmem %s1578_s13, 2048  ;;  %p1710_p2 = scmp.ne.s32.totalorder %s1693_s21, 0 }
 0x1b3   : > { %p1028_p13 = scmp.ne.s32.totalorder %s1578_s13, %s1027_s20  ;;  %s1187_s9 = smov [#allocation10]  }
 0x1b4   : > { %s1031_s14 = sshll.u32 %s1187_s9, 4  ;;  %s1032_s14 = int_to_ptr.vmem [resolvable:$false] %s1031_s14 }
 0x1b5   : > { %p1029_p4 = pnand %p1028_p13, %p1710_p2  ;;  %s1033_s27 = scalar_lea.vmem %s1032_s14, 4096 }
 0x1b6   : > { %s722_s12 = sshll.u32 %s1707_s2, 11  ;;  %p1034_p8 = scmp.lt.s32.totalorder %s1578_s13, %s1032_s14 }
 0x1b7   : > { %s1709_s15 = smov %s1708_s6  ;;  %s1575_s30 = scalar_lea.hbm %s1708_s6, %s722_s12 }
 0x1b8   : > { %p1030_p6 = pneg %p1029_p4  ;;  %p1035_p0 = scmp.lt.s32.totalorder %s1033_s27, %s1027_s20 }
 0x1ba   : > { %p1036_p5 = por %p1035_p0, %p1034_p8 }
 0x1bc   : > { %p1037_p7 = pnand %p1036_p5, %p1030_p6 }
 0x1be   : > { %1040 = shalt.err (!%p1037_p7)
}
 0x1bf   : > { %s1041_s10 = scalar_lea.hbm %s1575_s30, 2048  ;;  %s1045_s18 = scalar_lea.hbm %s1709_s15, 6144 }
 0x1c0   : > { %p1042_p1 = scmp.ne.s32.totalorder %s1575_s30, %s1041_s10  ;;  %p1046_p10 = scmp.lt.s32.totalorder %s1575_s30, %s1709_s15 }
 0x1c1   : > { %p1047_p9 = scmp.lt.s32.totalorder %s1045_s18, %s1041_s10 }
 0x1c2   : > { %p1043_p12 = pnand %p1042_p1, %p1710_p2 }
 0x1c3   : > { %p1048_p3 = por %p1047_p9, %p1046_p10 }
 0x1c4   : > { %p1044_p11 = pneg %p1043_p12 }
 0x1c6   : > { %p1049_p13 = pnand %p1048_p3, %p1044_p11 }
 0x1c8   : > { %1052 = shalt.err (!%p1049_p13)
}
 0x1c9   : > { %s1188_s17 = smov 128   ;;  %s1189_s22 = smov 8  }
 0x1ca   : > { %796 = dma.vmem_to_hbm [thread:$0]  (%p1710_p2), %s1578_s13, 2048, %s1575_s30, %s1582_s11, %s1188_s17, %s1188_s17, %s1189_s22  }
 0x1cb PF: > { %p814_p4 = scmp.ge.s32.totalorder %s1177_s8, 2  ;;  %s583_s6 = sand.u32 1, %s1125_s0  }
 0x1cc   : > { %p1711_p6 = scmp.ne.s32.totalorder %s1694_s16, 0  ;;  %s584_s20 = scalar_lea.sflag [#allocation7], %s583_s6 }
 0x1ce   : > { %p810_p8 = pnand %p814_p4, %p1711_p6 }
 0x1d0   : > { %p811_p0 = pneg %p810_p8 }
 0x1d2   : > { %1120 = dma.done.wait (%p811_p0), %s584_s20, 2048  }
 0x1d3   : > { %1122 = vsyncadd (%p811_p0), %s584_s20, 4294965248  ;;  %s31_s8 = sadd.s32 1, %s1177_s8   ;;  %s1713_s30 = sld [smem:[#allocation21_spill]] }
 0x1d4   : > { %p1610_p5 = scmp.ge.s32.totalorder %s31_s8, 8   ;;  %s1714_s21 = sld [smem:[#allocation22_spill]] }
 0x1d5   : > { %s1715_s6 = sld [smem:[#allocation23_spill]]  ;;  %s1717_s0 = smov %s1129_s1 }
 0x1d6   : > { %s1716_s16 = sld [smem:[#allocation24_spill]]  ;;  %s1718_s1 = smov %s1133_s23 }
 0x1d7   : > { %s1719_s23 = smov %s1419_s24  ;;  %s1720_s24 = smov %s1141_s25 }
 0x1d8   : > { %s1721_s25 = smov %s1145_s26  ;;  %s1722_s26 = smov %s1433_s7 }
 0x1d9   : > { %s1723_s27 = smov %s1153_s28  ;;  %s1724_s28 = smov %s1157_s29 }
 0x1da   : > { %s1725_s29 = smov %s1351_s5  ;;  %s1726_s5 = smov %s1714_s21 }
 0x1db   :  { %30 = sbr.rel (!%p1610_p5) target bundleno = 29 (0x1d), region = 94 }
 0x1dc   : > { %s1727_s7 = smov %s1716_s16 }
 0x1e0   :  { %589 = vsyncpa [#allocation6], 1 }
 0x1e1   :  { %591 = vsyncpa [#allocation6 + $0x1], 1 }
 0x1e2   :  { %592 = vsyncpa [#allocation9], 1 }
 0x1e3   :  { %594 = vsyncpa [#allocation9 + $0x1], 1 }
 0x1e4   :  { %595 = vsyncpa [#allocation7], 1 }
 0x1e5   :  { %597 = vsyncpa [#allocation7 + $0x1], 1 }

</bundles_post_ra>
